<compile_context>
chip_gen: v7x
topology: tpu7x:2x2x1
jax: 0.10.0
libtpu: 0.0.40
codegen_flags: <defaults>
</compile_context>

<pallas_src>
import math

import jax
import jax.numpy as jnp
from jax.experimental import pallas as pl
from jax.experimental.pallas import tpu as pltpu

_OUT_W = 8  # lane-0 = q1, lane-1 = q2, rest zero (last dim == full array dim -> legal)


def sac_critic_kernel(
    state_ref, action_ref,
    ws_ref, wa_ref, wmid_ref, wout_ref,
    b1_ref, b2_ref, b3_ref,
    out_ref,
):
    """Fused twin-Q forward for one batch tile.

    state_ref : (TB, state_dim)
    action_ref: (TB, action_dim)
    ws_ref    : (state_dim, NPAD)   rows of [W1|W4] belonging to `state`
    wa_ref    : (action_dim, NPAD)  rows of [W1|W4] belonging to `action`
    wmid_ref  : (NPAD, NPAD)        blkdiag(W2, W5)
    wout_ref  : (NPAD, 8)           col 0 = W3, col 1 = W6, rest zero
    b1_ref    : (1, NPAD)           [b1 | b4]
    b2_ref    : (1, NPAD)           [b2 | b5]
    b3_ref    : (1, 8)              lane 0 = b3, lane 1 = b6
    out_ref   : (TB, 8)             lane 0 = q1, lane 1 = q2
    """
    cdt = ws_ref.dtype  # compute dtype of the matmul operands (bf16 or f32)

    # Layer 1 (both heads fused). The split over state/action rows implements
    # the torch.cat without materializing `sa`. Accumulate in f32.
    x = (
        jnp.dot(state_ref[...].astype(cdt), ws_ref[...],
                preferred_element_type=jnp.float32)
        + jnp.dot(action_ref[...].astype(cdt), wa_ref[...],
                  preferred_element_type=jnp.float32)
        + b1_ref[...]
    )
    x = jnp.maximum(x, 0.0)

    # Layer 2: block-diagonal (W2, W5). Padded lanes stay exactly zero.
    x = jnp.dot(x.astype(cdt), wmid_ref[...],
                preferred_element_type=jnp.float32) + b2_ref[...]
    x = jnp.maximum(x, 0.0)

    # Layer 3: narrow (NPAD, 8) weights -> only 8 lanes of output written back.
    out_ref[...] = (
        jnp.dot(x.astype(cdt), wout_ref[...], preferred_element_type=jnp.float32)
        + b3_ref[...]
    ).astype(out_ref.dtype)


def init_linear_params(key, in_features, out_features):
    """PyTorch nn.Linear default init: U(-1/sqrt(fan_in), 1/sqrt(fan_in))."""
    kw, kb = jax.random.split(key)
    bound = 1.0 / math.sqrt(in_features)
    # stored as (in, out) so the math is x @ W
    w = jax.random.uniform(
        kw, (in_features, out_features), jnp.float32, minval=-bound, maxval=bound
    )
    b = jax.random.uniform(
        kb, (1, out_features), jnp.float32, minval=-bound, maxval=bound
    )
    return w, b


def make_sac_critic_params(key, input_size, hidden_size):
    keys = jax.random.split(key, 6)
    w1, b1 = init_linear_params(keys[0], input_size, hidden_size)
    w2, b2 = init_linear_params(keys[1], hidden_size, hidden_size)
    w3, b3 = init_linear_params(keys[2], hidden_size, 1)
    w4, b4 = init_linear_params(keys[3], input_size, hidden_size)
    w5, b5 = init_linear_params(keys[4], hidden_size, hidden_size)
    w6, b6 = init_linear_params(keys[5], hidden_size, 1)
    return (w1, b1, w2, b2, w3, b3, w4, b4, w5, b5, w6, b6)


def pack_sac_critic_params(params, state_dim, compute_dtype=jnp.bfloat16):
    """Pack the 12 per-layer tensors into lane-padded slabs for the kernel.

    Matmul operands (weights) are stored in `compute_dtype` (bf16 by default
    for the v6e/v7x MXU); biases stay f32 since bias-add/ReLU run in f32.
    """
    (w1, b1, w2, b2, w3, b3, w4, b4, w5, b5, w6, b6) = params
    _, h = w1.shape
    two_h = 2 * h
    npad = pl.cdiv(two_h, 128) * 128  # lane-dense fused hidden width

    # Layer 1: [W1 | W4] along the output axis, padded to npad lanes, split by
    # input rows into the state part and the action part.
    w_in = jnp.concatenate([w1, w4], axis=1)                  # (in, 2h)
    w_in = jnp.pad(w_in, ((0, 0), (0, npad - two_h)))         # (in, npad)
    ws = w_in[:state_dim].astype(compute_dtype)               # (state_dim, npad)
    wa = w_in[state_dim:].astype(compute_dtype)               # (action_dim, npad)

    # Layer 2: block-diagonal(W2, W5), zero-padded to (npad, npad).
    w_mid = jnp.zeros((npad, npad), jnp.float32)
    w_mid = w_mid.at[:h, :h].set(w2).at[h:two_h, h:two_h].set(w5)
    w_mid = w_mid.astype(compute_dtype)

    # Layer 3: narrow output slab -> W3 in lane 0, W6 in lane 1.
    w_out = jnp.zeros((npad, _OUT_W), jnp.float32)
    w_out = w_out.at[:h, 0:1].set(w3).at[h:two_h, 1:2].set(w6)
    w_out = w_out.astype(compute_dtype)

    b_in = jnp.pad(jnp.concatenate([b1, b4], axis=1), ((0, 0), (0, npad - two_h)))
    b_mid = jnp.pad(jnp.concatenate([b2, b5], axis=1), ((0, 0), (0, npad - two_h)))
    b_out = (
        jnp.zeros((1, _OUT_W), jnp.float32)
        .at[0, 0].set(b3[0, 0])
        .at[0, 1].set(b6[0, 0])
    )
    return ws, wa, w_mid, w_out, b_in, b_mid, b_out


def _choose_tiling(batch):
    """Pick (tile_b, padded_batch).

    tile_b is a multiple of 8 (<= 1024) and, whenever possible, the grid has
    >= 2 steps so the "parallel" batch axis can be sharded across v7x's two
    TensorCores and the activation stream stays double-buffered.
    """
    if batch <= 8:
        return batch, batch  # single block equal to the full dims (legal)
    padded8 = -(-batch // 8) * 8
    for tb in (1024, 512, 256, 128, 64, 32, 16, 8):
        if padded8 >= 2 * tb:
            padded = -(-padded8 // tb) * tb
            return tb, padded
    return padded8, padded8


def sac_critic_forward(state, action, packed_params):
    ws, wa, w_mid, w_out, b_in, b_mid, b_out = packed_params

    batch, state_dim = state.shape
    action_dim = action.shape[1]
    npad = ws.shape[1]
    out_w = w_out.shape[1]

    tile_b, padded_batch = _choose_tiling(batch)
    if padded_batch != batch:
        pad = padded_batch - batch
        state = jnp.pad(state, ((0, pad), (0, 0)))
        action = jnp.pad(action, ((0, pad), (0, 0)))
    grid = (padded_batch // tile_b,)

    # Resident (constant index_map) weight slabs: no double buffer needed when
    # they get big; keep the default pipelining for the small/common case.
    weight_bufs = 1 if npad >= 1024 else 2
    if npad >= 1024:
        def w_spec(shape):
            return pl.BlockSpec(shape, lambda i: (0, 0), pipeline_mode=pl.Buffered(1))
    else:
        def w_spec(shape):
            return pl.BlockSpec(shape, lambda i: (0, 0))

    itemsize_w = jnp.dtype(ws.dtype).itemsize
    itemsize_x = jnp.dtype(state.dtype).itemsize
    est_vmem = (
        weight_bufs * (ws.size + wa.size + w_mid.size + w_out.size) * itemsize_w
        + (b_in.size + b_mid.size + b_out.size) * 4 * 2
        + 2 * tile_b * (state_dim + action_dim) * itemsize_x   # streamed inputs
        + 2 * tile_b * out_w * 4                               # streamed output
        + 4 * tile_b * npad * 4                                # f32 intermediates headroom
    )
    vmem_limit = None
    if est_vmem > (32 << 20):
        vmem_limit = min(int(est_vmem * 1.25), 128 << 20)

    out = pl.pallas_call(
        sac_critic_kernel,
        out_shape=jax.ShapeDtypeStruct((padded_batch, out_w), jnp.float32),
        grid_spec=pltpu.PrefetchScalarGridSpec(
            num_scalar_prefetch=0,
            grid=grid,
            in_specs=[
                # streamed activations: tiled over the batch grid
                pl.BlockSpec((tile_b, state_dim), lambda i: (i, 0)),
                pl.BlockSpec((tile_b, action_dim), lambda i: (i, 0)),
                # parameters: full arrays, VMEM-resident across grid steps
                w_spec(ws.shape),
                w_spec(wa.shape),
                w_spec(w_mid.shape),
                w_spec(w_out.shape),
                w_spec(b_in.shape),
                w_spec(b_mid.shape),
                w_spec(b_out.shape),
            ],
            out_specs=pl.BlockSpec((tile_b, out_w), lambda i: (i, 0)),
        ),
        compiler_params=pltpu.CompilerParams(
            dimension_semantics=("parallel",),
            vmem_limit_bytes=vmem_limit,
        ),
    )(state, action, ws, wa, w_mid, w_out, b_in, b_mid, b_out)

    out = out[:batch]
    q1 = out[:, 0:1]
    q2 = out[:, 1:2]
    return q1, q2


def sac_critic_reference(state, action, params):
    """Pure-JAX reference (matches the PyTorch module's forward)."""
    (w1, b1, w2, b2, w3, b3, w4, b4, w5, b5, w6, b6) = params
    sa = jnp.concatenate([state, action], axis=1).astype(jnp.float32)
    h = jnp.maximum(sa @ w1 + b1, 0.0)
    h = jnp.maximum(h @ w2 + b2, 0.0)
    q1 = h @ w3 + b3
    g = jnp.maximum(sa @ w4 + b4, 0.0)
    g = jnp.maximum(g @ w5 + b5, 0.0)
    q2 = g @ w6 + b6
    return q1, q2


if __name__ == "__main__":
    # Small, deterministic example shapes.
    state_dim = 12
    action_dim = 4
    input_size = state_dim + action_dim  # 16
    hidden_size = 32

    key = jax.random.PRNGKey(0)
    k_s, k_a, k_p, k_s2, k_a2 = jax.random.split(key, 5)

    params = make_sac_critic_params(k_p, input_size, hidden_size)

    # --- small batch (single block path) -------------------------------------
    batch = 2
    state = jax.random.normal(k_s, (batch, state_dim), jnp.float32)
    action = jax.random.normal(k_a, (batch, action_dim), jnp.float32)
    q1_ref, q2_ref = sac_critic_reference(state, action, params)

    # f32 weight slabs: tight numerical check.
    packed_f32 = pack_sac_critic_params(params, state_dim, compute_dtype=jnp.float32)
    q1, q2 = sac_critic_forward(state, action, packed_f32)
    q1 = jax.block_until_ready(q1)
    q2 = jax.block_until_ready(q2)
    assert q1.shape == (batch, 1) and q2.shape == (batch, 1)
    assert jnp.allclose(q1, q1_ref, atol=1e-5, rtol=1e-5)
    assert jnp.allclose(q2, q2_ref, atol=1e-5, rtol=1e-5)

    # bf16 weight slabs (default fast path on v6e/v7x): loose tolerance.
    packed_bf16 = pack_sac_critic_params(params, state_dim)
    q1b, q2b = sac_critic_forward(state, action, packed_bf16)
    q1b = jax.block_until_ready(q1b)
    q2b = jax.block_until_ready(q2b)
    assert jnp.allclose(q1b, q1_ref, atol=6e-2, rtol=6e-2)
    assert jnp.allclose(q2b, q2_ref, atol=6e-2, rtol=6e-2)

    # --- ragged larger batch (padding + multi-step pipelined grid) ------------
    batch2 = 100
    state2 = jax.random.normal(k_s2, (batch2, state_dim), jnp.float32)
    action2 = jax.random.normal(k_a2, (batch2, action_dim), jnp.float32)
    q1r_ref, q2r_ref = sac_critic_reference(state2, action2, params)
    q1r, q2r = sac_critic_forward(state2, action2, packed_f32)
    q1r = jax.block_until_ready(q1r)
    q2r = jax.block_until_ready(q2r)
    assert q1r.shape == (batch2, 1) and q2r.shape == (batch2, 1)
    assert jnp.allclose(q1r, q1r_ref, atol=1e-5, rtol=1e-5)
    assert jnp.allclose(q2r, q2r_ref, atol=1e-5, rtol=1e-5)

    print("KERNEL_OK")
</pallas_src>

<mosaic_0001>
module attributes {stable_mosaic.version = 11 : i64} {
  func.func @sac_critic_kernel(%arg0: i32, %arg1: memref<2x12xf32, #tpu.memory_space<vmem>>, %arg2: memref<2x4xf32, #tpu.memory_space<vmem>>, %arg3: memref<12x128xf32, #tpu.memory_space<vmem>>, %arg4: memref<4x128xf32, #tpu.memory_space<vmem>>, %arg5: memref<128x128xf32, #tpu.memory_space<vmem>>, %arg6: memref<128x8xf32, #tpu.memory_space<vmem>>, %arg7: memref<1x128xf32, #tpu.memory_space<vmem>>, %arg8: memref<1x128xf32, #tpu.memory_space<vmem>>, %arg9: memref<1x8xf32, #tpu.memory_space<vmem>>, %arg10: memref<2x8xf32, #tpu.memory_space<vmem>>) attributes {dimension_semantics = [#tpu.dimension_semantics<parallel>], iteration_bounds = array<i64: 1>, scalar_prefetch = 0 : i64, scratch_operands = 0 : i64, tpu.core_type = #tpu.core_type<tc>, window_params = [{transform_indices = @transform_0, window_bounds = array<i64: 2, 12>}, {transform_indices = @transform_1, window_bounds = array<i64: 2, 4>}, {pipeline_mode = #tpu.pipeline_mode<synchronous>, transform_indices = @transform_2, window_bounds = array<i64: 12, 128>}, {pipeline_mode = #tpu.pipeline_mode<synchronous>, transform_indices = @transform_3, window_bounds = array<i64: 4, 128>}, {pipeline_mode = #tpu.pipeline_mode<synchronous>, transform_indices = @transform_4, window_bounds = array<i64: 128, 128>}, {pipeline_mode = #tpu.pipeline_mode<synchronous>, transform_indices = @transform_5, window_bounds = array<i64: 128, 8>}, {pipeline_mode = #tpu.pipeline_mode<synchronous>, transform_indices = @transform_6, window_bounds = array<i64: 1, 128>}, {pipeline_mode = #tpu.pipeline_mode<synchronous>, transform_indices = @transform_7, window_bounds = array<i64: 1, 128>}, {pipeline_mode = #tpu.pipeline_mode<synchronous>, transform_indices = @transform_8, window_bounds = array<i64: 1, 8>}, {transform_indices = @transform_9, window_bounds = array<i64: 2, 8>}]} {
    %c0 = arith.constant 0 : index
    %c0_0 = arith.constant 0 : index
    %0 = vector.load %arg1[%c0, %c0_0] : memref<2x12xf32, #tpu.memory_space<vmem>>, vector<2x12xf32>
    %c0_1 = arith.constant 0 : index
    %c0_2 = arith.constant 0 : index
    %1 = vector.load %arg3[%c0_1, %c0_2] : memref<12x128xf32, #tpu.memory_space<vmem>>, vector<12x128xf32>
    %cst = arith.constant dense<0.000000e+00> : vector<2x128xf32>
    %2 = tpu.matmul %0, %1, %cst {dimension_numbers = #tpu.dot_dimension_numbers<[1], [0], [0], [1], [0, 0, 1, 1], [], []>} : vector<2x12xf32>, vector<12x128xf32>, vector<2x128xf32> -> vector<2x128xf32>
    %c0_3 = arith.constant 0 : index
    %c0_4 = arith.constant 0 : index
    %3 = vector.load %arg2[%c0_3, %c0_4] : memref<2x4xf32, #tpu.memory_space<vmem>>, vector<2x4xf32>
    %c0_5 = arith.constant 0 : index
    %c0_6 = arith.constant 0 : index
    %4 = vector.load %arg4[%c0_5, %c0_6] : memref<4x128xf32, #tpu.memory_space<vmem>>, vector<4x128xf32>
    %cst_7 = arith.constant dense<0.000000e+00> : vector<2x128xf32>
    %5 = tpu.matmul %3, %4, %cst_7 {dimension_numbers = #tpu.dot_dimension_numbers<[1], [0], [0], [1], [0, 0, 1, 1], [], []>} : vector<2x4xf32>, vector<4x128xf32>, vector<2x128xf32> -> vector<2x128xf32>
    %6 = arith.addf %2, %5 : vector<2x128xf32>
    %c0_8 = arith.constant 0 : index
    %c0_9 = arith.constant 0 : index
    %7 = vector.load %arg7[%c0_8, %c0_9] : memref<1x128xf32, #tpu.memory_space<vmem>>, vector<1x128xf32>
    %8 = vector.broadcast %7 : vector<1x128xf32> to vector<2x128xf32>
    %9 = arith.addf %6, %8 : vector<2x128xf32>
    %cst_10 = arith.constant 0.000000e+00 : f32
    %10 = vector.broadcast %cst_10 : f32 to vector<2x128xf32>
    %11 = arith.maximumf %9, %10 : vector<2x128xf32>
    %c0_11 = arith.constant 0 : index
    %c0_12 = arith.constant 0 : index
    %12 = vector.load %arg5[%c0_11, %c0_12] : memref<128x128xf32, #tpu.memory_space<vmem>>, vector<128x128xf32>
    %cst_13 = arith.constant dense<0.000000e+00> : vector<2x128xf32>
    %13 = tpu.matmul %11, %12, %cst_13 {dimension_numbers = #tpu.dot_dimension_numbers<[1], [0], [0], [1], [0, 0, 1, 1], [], []>} : vector<2x128xf32>, vector<128x128xf32>, vector<2x128xf32> -> vector<2x128xf32>
    %c0_14 = arith.constant 0 : index
    %c0_15 = arith.constant 0 : index
    %14 = vector.load %arg8[%c0_14, %c0_15] : memref<1x128xf32, #tpu.memory_space<vmem>>, vector<1x128xf32>
    %15 = vector.broadcast %14 : vector<1x128xf32> to vector<2x128xf32>
    %16 = arith.addf %13, %15 : vector<2x128xf32>
    %cst_16 = arith.constant 0.000000e+00 : f32
    %17 = vector.broadcast %cst_16 : f32 to vector<2x128xf32>
    %18 = arith.maximumf %16, %17 : vector<2x128xf32>
    %c0_17 = arith.constant 0 : index
    %c0_18 = arith.constant 0 : index
    %19 = vector.load %arg6[%c0_17, %c0_18] : memref<128x8xf32, #tpu.memory_space<vmem>>, vector<128x8xf32>
    %cst_19 = arith.constant dense<0.000000e+00> : vector<2x8xf32>
    %20 = tpu.matmul %18, %19, %cst_19 {dimension_numbers = #tpu.dot_dimension_numbers<[1], [0], [0], [1], [0, 0, 1, 1], [], []>} : vector<2x128xf32>, vector<128x8xf32>, vector<2x8xf32> -> vector<2x8xf32>
    %c0_20 = arith.constant 0 : index
    %c0_21 = arith.constant 0 : index
    %21 = vector.load %arg9[%c0_20, %c0_21] : memref<1x8xf32, #tpu.memory_space<vmem>>, vector<1x8xf32>
    %22 = vector.broadcast %21 : vector<1x8xf32> to vector<2x8xf32>
    %23 = arith.addf %20, %22 : vector<2x8xf32>
    %c0_22 = arith.constant 0 : index
    %c0_23 = arith.constant 0 : index
    %24 = vector.load %arg10[%c0_22, %c0_23] : memref<2x8xf32, #tpu.memory_space<vmem>>, vector<2x8xf32>
    tpu.vector_store %arg10[%c0_22, %c0_23], %23 {strides = array<i32>} : memref<2x8xf32, #tpu.memory_space<vmem>>, vector<2x8xf32>,
    return
  }
  func.func @transform_0(%arg0: i32) -> (i32, i32) {
    %c0_i32 = arith.constant 0 : i32
    %c0_i32_0 = arith.constant 0 : i32
    return %arg0, %c0_i32 : i32, i32
  }
  func.func @transform_1(%arg0: i32) -> (i32, i32) {
    %c0_i32 = arith.constant 0 : i32
    %c0_i32_0 = arith.constant 0 : i32
    return %arg0, %c0_i32 : i32, i32
  }
  func.func @transform_2(%arg0: i32) -> (i32, i32) {
    %c0_i32 = arith.constant 0 : i32
    %c0_i32_0 = arith.constant 0 : i32
    %c0_i32_1 = arith.constant 0 : i32
    return %c0_i32, %c0_i32_0 : i32, i32
  }
  func.func @transform_3(%arg0: i32) -> (i32, i32) {
    %c0_i32 = arith.constant 0 : i32
    %c0_i32_0 = arith.constant 0 : i32
    %c0_i32_1 = arith.constant 0 : i32
    return %c0_i32, %c0_i32_0 : i32, i32
  }
  func.func @transform_4(%arg0: i32) -> (i32, i32) {
    %c0_i32 = arith.constant 0 : i32
    %c0_i32_0 = arith.constant 0 : i32
    %c0_i32_1 = arith.constant 0 : i32
    return %c0_i32, %c0_i32_0 : i32, i32
  }
  func.func @transform_5(%arg0: i32) -> (i32, i32) {
    %c0_i32 = arith.constant 0 : i32
    %c0_i32_0 = arith.constant 0 : i32
    %c0_i32_1 = arith.constant 0 : i32
    return %c0_i32, %c0_i32_0 : i32, i32
  }
  func.func @transform_6(%arg0: i32) -> (i32, i32) {
    %c0_i32 = arith.constant 0 : i32
    %c0_i32_0 = arith.constant 0 : i32
    %c0_i32_1 = arith.constant 0 : i32
    return %c0_i32, %c0_i32_0 : i32, i32
  }
  func.func @transform_7(%arg0: i32) -> (i32, i32) {
    %c0_i32 = arith.constant 0 : i32
    %c0_i32_0 = arith.constant 0 : i32
    %c0_i32_1 = arith.constant 0 : i32
    return %c0_i32, %c0_i32_0 : i32, i32
  }
  func.func @transform_8(%arg0: i32) -> (i32, i32) {
    %c0_i32 = arith.constant 0 : i32
    %c0_i32_0 = arith.constant 0 : i32
    %c0_i32_1 = arith.constant 0 : i32
    return %c0_i32, %c0_i32_0 : i32, i32
  }
  func.func @transform_9(%arg0: i32) -> (i32, i32) {
    %c0_i32 = arith.constant 0 : i32
    %c0_i32_0 = arith.constant 0 : i32
    return %arg0, %c0_i32 : i32, i32
  }
}

</mosaic_0001>

<bundles_post_ra>
// kernel: tpu_custom_call.1
= control target key start
LH: loop header
LB: loop body
LE: loop exit
PB: predicated region body
PF: predicated region fallthrough
CT: control target
= control target key end

     0   :  { %14 = vsyncpa [#allocation3], 0  ;;  %s918_s0 = inlined_call_operand.vmem [shape: f32[2,12], index: 0, kind: input, shape index: {}]   ;;  %s919_s1 = inlined_call_operand.hbm [shape: f32[2,4], index: 1, kind: input, shape index: {}]   ;;  %s920_s2 = inlined_call_operand.vmem [shape: f32[12,128], index: 2, kind: input, shape index: {}]   ;;  %s921_s3 = inlined_call_operand.hbm [shape: f32[4,128], index: 3, kind: input, shape index: {}]   ;;  %s922_s4 = inlined_call_operand.vmem [shape: f32[128,128], index: 4, kind: input, shape index: {}]   ;;  %s923_s5 = inlined_call_operand.vmem [shape: f32[128,8], index: 5, kind: input, shape index: {}]   ;;  %s924_s6 = inlined_call_operand.vmem [shape: f32[1,128], index: 6, kind: input, shape index: {}]   ;;  %s925_s7 = inlined_call_operand.vmem [shape: f32[1,128], index: 7, kind: input, shape index: {}]   ;;  %s926_s8 = inlined_call_operand.vmem [shape: f32[1,8], index: 8, kind: input, shape index: {}]   ;;  %s927_s9 = inlined_call_operand.hbm [shape: f32[2,8], index: 9, kind: output, shape index: {}]  }
   0x1   :  { %15 = vsyncpa [#allocation6], 0 }
   0x2   :  { %16 = vsyncpa [#allocation4], 0  ;;  %s690_s30 = smov [#allocation2]   ;;  %s691_s11 = smov [#allocation5]  }
   0x3   :  { %s25_s10 = sshll.u32 %s690_s30, 4  ;;  %s37_s12 = sshll.u32 %s691_s11, 4  ;;  %s26_s10 = int_to_ptr.vmem [resolvable:$true] %s25_s10  ;;  %s38_s12 = int_to_ptr.vmem [resolvable:$true] %s37_s12 }
   0x4   :  { %s618_s15 = scalar_lea.hbm %s919_s1, 32 }
   0x5   :  { %p619_p0 = scmp.ne.s32.totalorder %s919_s1, %s618_s15  ;;  %p622_p1 = scmp.lt.u32.totalorder %s618_s15, %s919_s1 }
   0x7   :  { %p624_p2 = pnand %p622_p1, %p619_p0 }
   0x9   :  { %627 = shalt.err (!%p624_p2)
}
   0xa   :  { %s628_s20 = scalar_lea.vmem %s26_s10, 32  ;;  %p633_p4 = scmp.lt.s32.totalorder %s26_s10, %s26_s10 }
   0xb   :  { %p629_p3 = scmp.ne.s32.totalorder %s26_s10, %s628_s20  ;;  %p634_p5 = scmp.lt.s32.totalorder %s628_s20, %s628_s20 }
   0xd   :  { %p635_p6 = por %p634_p5, %p633_p4 }
   0xf   :  { %p636_p7 = pnand %p635_p6, %p629_p3 }
  0x11   :  { %639 = shalt.err (!%p636_p7)
}
  0x12   :  { %28 = dma.hbm_to_vmem [thread:$0]  %s919_s1, 32, %s26_s10, [#allocation3]  }
  0x13   :  { %s640_s25 = scalar_lea.hbm %s921_s3, 64 }
  0x14   :  { %p641_p8 = scmp.ne.s32.totalorder %s921_s3, %s640_s25  ;;  %p644_p9 = scmp.lt.u32.totalorder %s640_s25, %s921_s3 }
  0x16   :  { %p646_p10 = pnand %p644_p9, %p641_p8 }
  0x18   :  { %649 = shalt.err (!%p646_p10)
}
  0x19   :  { %s650_s30 = scalar_lea.vmem %s38_s12, 64  ;;  %p655_p12 = scmp.lt.s32.totalorder %s38_s12, %s38_s12 }
  0x1a   :  { %p651_p11 = scmp.ne.s32.totalorder %s38_s12, %s650_s30  ;;  %p656_p13 = scmp.lt.s32.totalorder %s650_s30, %s650_s30 }
  0x1c   :  { %p657_p0 = por %p656_p13, %p655_p12 }
  0x1e   :  { %p658_p1 = pnand %p657_p0, %p651_p11 }
  0x20   :  { %661 = shalt.err (!%p658_p1)
}
  0x21   :  { %40 = dma.hbm_to_vmem [thread:$0]  %s921_s3, 64, %s38_s12, [#allocation6]  }
  0x22   :  { %684 = dma.done.wait [#allocation3], 32  }
  0x23   :  { %685 = vsyncadd [#allocation3], 4294967264 }
  0x24   :  { %686 = dma.done.wait [#allocation6], 64  }
  0x25   :  { %687 = vsyncadd [#allocation6], 4294967232  ;;  %v692_v0 = vmov 0.0|0.0   ;;  %v693_v1 = vmov 0.0   ;;  %vm694_vm0 = vmmov 0   ;;  %vm66_vm1 = vcmask 1043456  }
  0x26   :  { %559 = vmatprep.subr.bf16.mxu1 %v692_v0  ;;  %477 = vmatprep.subr.mxu0 %v693_v1  ;;  %vm695_vm2 = vmmov 1   ;;  %vm62_vm4 = vcmask 31744   ;;  %v58_v2 = vld [vmem:[%s920_s2] sm:$0xff]  ;;  %v59_v3 = vld [vmem:[%s920_s2 + $0x8] sm:$0xf]  ;;  %v228_v9 = vld [vmem:[%s922_s4 + $0x10] sm:$0xff] }
  0x27   :  { %479 = vmatprep.mubr.msk.f32.mxu0 %vm694_vm0, %v693_v1  ;;  %486 = vmatprep.mubr.msk.f32.mxu1 %vm694_vm0, %v693_v1  ;;  %vm561_vm3 = vmpackc.low %vm66_vm1, %vm695_vm2  ;;  %v61_v4 = vld [vmem:[#allocation5] sm:$0xf]  ;;  %v560_v5 = vpack.c.bf16 %v59_v3, %v58_v2  ;;  %v60_v6 = vld [vmem:[#allocation2] sm:$0x3]  ;;  %vm140_vm5 = vcmask 97280   ;;  %s696_s1 = smov [#allocation7]  }
  0x28   :  { %478 = vmatpush3.msk.msra.mxu0 %vm66_vm1, %v61_v4  ;;  %v226_v7 = vld [vmem:[%s922_s4] sm:$0xff]  ;;  %v227_v8 = vld [vmem:[%s922_s4 + $0x8] sm:$0xff]  ;;  %v229_v10 = vld [vmem:[%s922_s4 + $0x18] sm:$0xff]  ;;  %s421_s10 = sshll.u32 %s696_s1, 4  ;;  %vm413_vm6 = vcmask 58368   ;;  %s422_s10 = int_to_ptr.vmem [resolvable:$true] %s421_s10 }
  0x29   :  { %480 = vmatmul.mubr.msk.f32.vlgmr.msra.gmra.mrb[0].mxu0 %vm62_vm4, %v60_v6  ;;  %563 = vmatprep.subr.bf16.mxu0 %v692_v0  ;;  %v57_v11 = vld [vmem:[%s918_s0] sm:$0x3]  ;;  %v564_v12 = vpack.c.bf16 %v227_v8, %v226_v7  ;;  %v567_v13 = vpack.c.bf16 %v229_v10, %v228_v9  ;;  %v231_v15 = vld [vmem:[%s922_s4 + $0x28] sm:$0xff]  ;;  %v232_v17 = vld [vmem:[%s922_s4 + $0x30] sm:$0xff]  ;;  %p667_p3 = scmp.lt.s32.totalorder %s422_s10, %s422_s10 }
  0x2a   :  { %562 = vmatpush3.bf16.msk.msra.mxu1 %vm561_vm3, %v560_v5  ;;  %521 = vmatprep.mubr.msk.f32.mxu0 %vm694_vm0, %v693_v1  ;;  %v230_v14 = vld [vmem:[%s922_s4 + $0x20] sm:$0xff]  ;;  %v233_v18 = vld [vmem:[%s922_s4 + $0x38] sm:$0xff]  ;;  %v235_v21 = vld [vmem:[%s922_s4 + $0x48] sm:$0xff] }
  0x2b   :  { %587 = vmatprep.subr.bf16.mxu1 %v692_v0  ;;  %565 = vmatpush3.bf16.msra.mxu0 %v564_v12  ;;  %v570_v16 = vpack.c.bf16 %v231_v15, %v230_v14  ;;  %v573_v19 = vpack.c.bf16 %v233_v18, %v232_v17  ;;  %v234_v20 = vld [vmem:[%s922_s4 + $0x40] sm:$0xff]  ;;  %v236_v23 = vld [vmem:[%s922_s4 + $0x50] sm:$0xff]  ;;  %v237_v24 = vld [vmem:[%s922_s4 + $0x58] sm:$0xff] }
  0x2c   :  { %566 = vmatprep.subr.bf16.mxu0 %v692_v0  ;;  %v576_v22 = vpack.c.bf16 %v235_v21, %v234_v20  ;;  %v579_v25 = vpack.c.bf16 %v237_v24, %v236_v23  ;;  %v238_v26 = vld [vmem:[%s922_s4 + $0x60] sm:$0xff]  ;;  %v239_v27 = vld [vmem:[%s922_s4 + $0x68] sm:$0xff]  ;;  %v240_v29 = vld [vmem:[%s922_s4 + $0x70] sm:$0xff] }
  0x2d   :  { %487 = vmatmul.mubr.msk.f32.vlgmr.msra.gmra.mrb[0].mxu1 %vm140_vm5, %v57_v11  ;;  %v582_v28 = vpack.c.bf16 %v239_v27, %v238_v26  ;;  %v241_v30 = vld [vmem:[%s922_s4 + $0x78] sm:$0xff]  ;;  %v320_v32 = vld [vmem:[%s923_s5] sm:$0xff]  ;;  %v321_v33 = vld [vmem:[%s923_s5 + $0x8] sm:$0xff] }
  0x2e   :  { %556 = vmatprep.mubr.msk.f32.mxu1 %vm694_vm0, %v693_v1  ;;  %v585_v31 = vpack.c.bf16 %v241_v30, %v240_v29  ;;  %v322_v34 = vld [vmem:[%s923_s5 + $0x10] sm:$0xff]  ;;  %v588_v35 = vpack.c.bf16 %v321_v33, %v320_v32  ;;  %v323_v36 = vld [vmem:[%s923_s5 + $0x18] sm:$0xff]  ;;  %v324_v38 = vld [vmem:[%s923_s5 + $0x20] sm:$0xff] }
  0x2f   :  { %568 = vmatpush3.bf16.msra.mxu0 %v567_v13  ;;  %v591_v37 = vpack.c.bf16 %v323_v36, %v322_v34  ;;  %v325_v39 = vld [vmem:[%s923_s5 + $0x28] sm:$0xff]  ;;  %v326_v41 = vld [vmem:[%s923_s5 + $0x30] sm:$0xff]  ;;  %v327_v42 = vld [vmem:[%s923_s5 + $0x38] sm:$0xff] }
  0x30   :  { %569 = vmatprep.subr.bf16.mxu0 %v692_v0  ;;  %589 = vmatpush3.bf16.msra.mxu1 %v588_v35  ;;  %v594_v40 = vpack.c.bf16 %v325_v39, %v324_v38  ;;  %v597_v43 = vpack.c.bf16 %v327_v42, %v326_v41  ;;  %v328_v44 = vld [vmem:[%s923_s5 + $0x40] sm:$0xff]  ;;  %v329_v45 = vld [vmem:[%s923_s5 + $0x48] sm:$0xff]  ;;  %v330_v47 = vld [vmem:[%s923_s5 + $0x50] sm:$0xff] }
  0x31   :  { %590 = vmatprep.subr.bf16.mxu1 %v692_v0  ;;  %v600_v46 = vpack.c.bf16 %v329_v45, %v328_v44  ;;  %v331_v48 = vld [vmem:[%s923_s5 + $0x58] sm:$0xff]  ;;  %v332_v50 = vld [vmem:[%s923_s5 + $0x60] sm:$0xff]  ;;  %v333_v51 = vld [vmem:[%s923_s5 + $0x68] sm:$0xff] }
  0x32   :  { %v603_v49 = vpack.c.bf16 %v331_v48, %v330_v47  ;;  %v606_v52 = vpack.c.bf16 %v333_v51, %v332_v50  ;;  %v435_v56 = vld [vmem:[%s924_s6] ss:$0 sm:$0xff]  ;;  %v334_v61 = vld [vmem:[%s923_s5 + $0x70] sm:$0xff]  ;;  %v335_v62 = vld [vmem:[%s923_s5 + $0x78] sm:$0xff]  ;;  %s662_s5 = scalar_lea.vmem %s422_s10, 32 }
  0x33   :  { %571 = vmatpush3.bf16.msra.mxu0 %v570_v16  ;;  %v609_v63 = vpack.c.bf16 %v335_v62, %v334_v61  ;;  %v437_v5 = vld [vmem:[%s926_s8] ss:$0 sm:$0xff]  ;;  %p663_p2 = scmp.ne.s32.totalorder %s422_s10, %s662_s5  ;;  %p668_p4 = scmp.lt.s32.totalorder %s662_s5, %s662_s5 }
  0x34   :  { %572 = vmatprep.subr.bf16.mxu0 %v692_v0  ;;  %592 = vmatpush3.bf16.msra.mxu1 %v591_v37 }
  0x35   :  { %593 = vmatprep.subr.bf16.mxu1 %v692_v0  ;;  %p669_p5 = por %p668_p4, %p667_p3 }
  0x37   :  { %574 = vmatpush3.bf16.msra.mxu0 %v573_v19  ;;  %p670_p6 = pnand %p669_p5, %p663_p2 }
  0x38   :  { %575 = vmatprep.subr.bf16.mxu0 %v692_v0  ;;  %595 = vmatpush3.bf16.msra.mxu1 %v594_v40 }
  0x39   :  { %596 = vmatprep.subr.bf16.mxu1 %v692_v0 }
  0x3b   :  { %577 = vmatpush3.bf16.msra.mxu0 %v576_v22 }
  0x3c   :  { %578 = vmatprep.subr.bf16.mxu0 %v692_v0  ;;  %598 = vmatpush3.bf16.msra.mxu1 %v597_v43 }
  0x3d   :  { %599 = vmatprep.subr.bf16.mxu1 %v692_v0 }
  0x3f   :  { %580 = vmatpush3.bf16.msra.mxu0 %v579_v25 }
  0x40   :  { %581 = vmatprep.subr.bf16.mxu0 %v692_v0  ;;  %601 = vmatpush3.bf16.msra.mxu1 %v600_v46 }
  0x41   :  { %602 = vmatprep.subr.bf16.mxu1 %v692_v0 }
  0x43   :  { %583 = vmatpush3.bf16.msra.mxu0 %v582_v28 }
  0x44   :  { %584 = vmatprep.subr.bf16.mxu0 %v692_v0  ;;  %604 = vmatpush3.bf16.msra.mxu1 %v603_v49 }
  0x45   :  { %605 = vmatprep.subr.bf16.mxu1 %v692_v0 }
  0x47   :  { %586 = vmatpush3.bf16.msra.mxu0 %v585_v31 }
  0x48   :  { %607 = vmatpush3.bf16.msra.mxu1 %v606_v52 }
  0x49   :  { %608 = vmatprep.subr.bf16.mxu1 %v692_v0  ;;  %v436_v0 = vld [vmem:[%s925_s7] ss:$0 sm:$0xff] }
  0x4c   :  { %610 = vmatpush3.bf16.msra.mxu1 %v609_v63 }
  0xfc   :  { %v136_v53 = vpop.f32.mrb[0].mxu0 }
  0xfd   :  { %v481_v54 = vpop.f32.mrb[1].mxu0 }
 0x100   :  { %v213_v55 = vpop.f32.mrb[0].mxu1 }
 0x101   :  { %v214_v57 = vadd.f32 %v213_v55, %v136_v53  ;;  %v488_v58 = vpop.f32.mrb[1].mxu1 }
 0x103   :  { %v224_v59 = vadd.f32 %v435_v56, %v214_v57 }
 0x105   :  { %v225_v60 = vmax.f32 %v224_v59, 0.0 }
 0x107   :  { %522 = vmatmul.mubr.f32.vlgmr.msra.gmra.mrb[2].mxu0 %v225_v60 }
 0x1da   :  { %v315_v1 = vpop.f32.mrb[2].mxu0 }
 0x1db   :  { %v316_v2 = vadd.f32 %v436_v0, %v315_v1  ;;  %v523_v3 = vpop.f32.mrb[3].mxu0 }
 0x1dd   :  { %v319_v4 = vmax.f32 %v316_v2, 0.0 }
 0x1df   :  { %557 = vmatmul.mubr.f32.vlgmr.msra.gmra.mrb[2].mxu1 %v319_v4 }
 0x2b2   :  { %v409_v6 = vpop.f32.mrb[2].mxu1 }
 0x2b3   :  { %v410_v7 = vadd.f32 %v437_v5, %v409_v6  ;;  %v558_v8 = vpop.f32.mrb[3].mxu1 }
 0x2b5   :  { %414 = vst.msk [vmem:[#allocation7] sm:$0x3] %vm413_vm6, %v410_v7 }
 0x2b6   :  { %673 = shalt.err (!%p670_p6)
}
 0x2b7   :  { %s674_s3 = scalar_lea.hbm %s927_s9, 32 }
 0x2b8   :  { %p675_p7 = scmp.ne.s32.totalorder %s927_s9, %s674_s3  ;;  %p678_p8 = scmp.lt.u32.totalorder %s674_s3, %s927_s9 }
 0x2ba   :  { %p680_p9 = pnand %p678_p8, %p675_p7 }
 0x2bc   :  { %683 = shalt.err (!%p680_p9)
}
 0x2bd   :  { %424 = dma.vmem_to_hbm [thread:$0]  %s422_s10, 32, %s927_s9, [#allocation4]  }
 0x2be   :  { %688 = dma.done.wait [#allocation4], 32  }
 0x2bf   :  { %689 = vsyncadd [#allocation4], 4294967264 }
 0x2c0   :  { %428 = vsyncpa [#allocation3], 1 }
 0x2c1   :  { %429 = vsyncpa [#allocation6], 1 }
 0x2c2   :  { %430 = vsyncpa [#allocation4], 1 }

</bundles_post_ra>
